<compile_context>
chip_gen: v6e
topology: v6e:2x2x1
jax: 0.10.0
libtpu: 0.0.40
codegen_flags: <defaults>
</compile_context>

<pallas_src>
import jax
import jax.numpy as jnp
from jax.experimental import pallas as pl
from jax.experimental.pallas import tpu as pltpu

B = 8           # batch_size
NUM_SENT = 2    # sentence views -> z1 / z2
H = 32          # hidden_size
C = 4           # num_label
TEMP = 0.05     # self.temp
ALPHA = 0.15    # self.alpha


def _promptcl_loss_kernel(h_ref, w_ref, b_ref, logits_ref, labels_ref, out_ref):
    # ---- pooler: y = x @ W^T + b (PyTorch nn.Linear layout), both sentence
    # ---- views in one MXU pass; NT dot_general so no wrapper transpose.
    z = jnp.tanh(
        jax.lax.dot_general(h_ref[...], w_ref[...], (((1,), (1,)), ((), ())),
                            preferred_element_type=jnp.float32)
        + b_ref[...])                                                  # (2B, H)

    # ---- L2-normalize the stacked z once (F.normalize, eps=1e-12 on the
    # ---- norm -> 1e-24 clamp on the squared norm), then split views.
    n = z * jax.lax.rsqrt(jnp.maximum(jnp.sum(z * z, -1, keepdims=True), 1e-24))
    n1 = n[:B, :]                                                      # (B, H)
    n2 = n[B:, :]                                                      # (B, H)

    # ---- cosine-sim matrix on unit vectors: n1 @ n2^T / temp
    g = jax.lax.dot_general(n1, n2, (((1,), (1,)), ((), ())),
                            preferred_element_type=jnp.float32)        # (B, B)
    cos_sim = g * (1.0 / TEMP)

    # ---- PairwiseDistance(p=2, eps=1e-6) on unit vectors, expanded:
    # ---- ||n1_i - n2_j + eps||^2 = 2 - 2 g_ij + H eps^2  (the 2*eps*sum(diff)
    # ---- cross-term is dropped: <=4e-6 perturbation on O(1) values).
    eps = 1e-6
    dist_sq = 2.0 - 2.0 * g + H * eps * eps
    distance = jnp.sqrt(jnp.maximum(dist_sq, 0.0))                     # (B, B)

    # ---- one-hot labels built in-kernel (single vcmp + select)
    labels = labels_ref[...]                                           # (B, 1) i32
    iota = jax.lax.broadcasted_iota(jnp.int32, (B, C), 1)
    onehot = (iota == labels).astype(jnp.float32)                      # (B, C)

    # pos_mask[i,j] = (label_i == label_j) via one-hot @ one-hot^T (exact 0/1)
    pos_mask = jax.lax.dot_general(onehot, onehot, (((1,), (1,)), ((), ())),
                                   preferred_element_type=jnp.float32)  # (B, B)
    neg_number = jnp.sum(1.0 - pos_mask, axis=1, keepdims=True)          # (B, 1)

    masked = jnp.where(pos_mask > 0.5, -10000000.0, -distance)
    mmax = jnp.max(masked, axis=1, keepdims=True)
    mexp = jnp.exp(masked - mmax)
    softm = mexp * pl.reciprocal(jnp.sum(mexp, axis=1, keepdims=True),
                                 approx=True)
    neg_weights = neg_number * softm + pos_mask

    exp_dot = jnp.exp(cos_sim)                                           # (B, B)
    denom = jnp.sum(exp_dot * neg_weights, axis=1, keepdims=True)        # (B, 1)

    # ---- mask_combined == eye => only the diagonal of log_prob survives and
    # ---- cardinality_per_samples == 1. Keep the original "+1e-5" semantics.
    diag_cos = jnp.sum(n1 * n2, axis=-1, keepdims=True) * (1.0 / TEMP)   # (B, 1)
    diag_exp = jnp.exp(diag_cos)                                         # (B, 1)
    cl_per_sample = -jnp.log(diag_exp * pl.reciprocal(denom, approx=True)
                             + 1e-5)                                     # (B, 1)

    # ---- cross-entropy on logits0 vs classify_labels (per-sample terms)
    logits = logits_ref[...]                                             # (B, C)
    lmax = jnp.max(logits, axis=1, keepdims=True)
    lse = jnp.log(jnp.sum(jnp.exp(logits - lmax), axis=1, keepdims=True)) + lmax
    picked = jnp.sum(logits * onehot, axis=1, keepdims=True)             # (B, 1)

    # ---- fused epilogue: one cross-sublane reduce, scalar out through SMEM
    per_sample = (lse - picked) + ALPHA * cl_per_sample                  # (B, 1)
    out_ref[0, 0] = jnp.sum(per_sample) * (1.0 / B)


def promptcl_forward(mask_hidden, logits, classify_labels, dense_w, dense_b):
    """mask_hidden: (B*NUM_SENT, H) [interleaved per-sentence rows],
       logits: (B*NUM_SENT, C), classify_labels: (B,) int,
       dense_w: (H, H) PyTorch layout (y = x @ W.T + b), dense_b: (H,)."""
    hidden = mask_hidden.reshape(B, NUM_SENT, H)
    # de-interleave sentence views so the pooler is a single stacked matmul
    h_stacked = jnp.concatenate([hidden[:, 0, :], hidden[:, 1, :]], axis=0)  # (2B, H)
    logits0 = logits.reshape(B, NUM_SENT, C)[:, 0, :]                        # (B, C)
    labels = classify_labels.reshape(B, 1).astype(jnp.int32)                 # (B, 1)
    bias = dense_b.reshape(1, H)                                             # (1, H)

    vmem = lambda: pl.BlockSpec(memory_space=pltpu.MemorySpace.VMEM)
    out = pl.pallas_call(
        _promptcl_loss_kernel,
        out_shape=jax.ShapeDtypeStruct((1, 1), jnp.float32),
        in_specs=[vmem(), vmem(), vmem(), vmem(), vmem()],
        out_specs=pl.BlockSpec(memory_space=pltpu.MemorySpace.SMEM),
    )(h_stacked, dense_w, bias, logits0, labels)
    return out[0, 0]


def promptcl_reference(mask_hidden, logits, classify_labels, dense_w, dense_b):
    """Pure-JAX mirror of the PyTorch forward (for verification)."""
    hidden = mask_hidden.reshape(B, NUM_SENT, H)
    pooler = jnp.tanh(jnp.einsum("bsh,oh->bso", hidden, dense_w) + dense_b)
    z1, z2 = pooler[:, 0], pooler[:, 1]
    norm1 = jnp.linalg.norm(z1, axis=-1, keepdims=True)
    norm2 = jnp.linalg.norm(z2, axis=-1, keepdims=True)
    cos_sim = (z1 @ z2.T) / jnp.maximum(norm1 * norm2.T, 1e-8) / TEMP
    n1 = z1 / jnp.maximum(norm1, 1e-12)
    n2 = z2 / jnp.maximum(norm2, 1e-12)
    diff = n1[:, None, :] - n2[None, :, :] + 1e-6
    distance = jnp.sqrt(jnp.sum(diff * diff, axis=-1))
    eye = jnp.eye(B, dtype=jnp.float32)
    pos = (classify_labels[:, None] == classify_labels[None, :]).astype(jnp.float32)
    neg_number = jnp.sum(1.0 - pos, axis=1, keepdims=True)
    masked = jnp.where(pos > 0.5, -10000000.0, -distance)
    neg_weights = neg_number * jax.nn.softmax(masked, axis=1) + pos
    exp_dot = jnp.exp(cos_sim)
    log_prob = -jnp.log(exp_dot / jnp.sum(exp_dot * neg_weights, axis=1, keepdims=True) + 1e-5)
    cl_loss = jnp.mean(jnp.sum(log_prob * eye, axis=1))
    logits0 = logits.reshape(B, NUM_SENT, C)[:, 0]
    lse = jax.scipy.special.logsumexp(logits0, axis=1)
    picked = logits0[jnp.arange(B), classify_labels]
    ce_loss = jnp.mean(lse - picked)
    return ce_loss + ALPHA * cl_loss


if __name__ == "__main__":
    key = jax.random.PRNGKey(0)
    k1, k2, k3, k4, k5 = jax.random.split(key, 5)

    # deterministic "encoder outputs" and dense-layer parameters
    mask_hidden = jax.random.normal(k1, (B * NUM_SENT, H), dtype=jnp.float32)
    logits = jax.random.normal(k2, (B * NUM_SENT, C), dtype=jnp.float32)
    classify_labels = jax.random.randint(k3, (B,), 0, C, dtype=jnp.int32)
    dense_w = 0.05 * jax.random.normal(k4, (H, H), dtype=jnp.float32)
    dense_b = 0.01 * jax.random.normal(k5, (H,), dtype=jnp.float32)

    loss = promptcl_forward(mask_hidden, logits, classify_labels, dense_w, dense_b)
    loss = jax.block_until_ready(loss)

    ref = promptcl_reference(mask_hidden, logits, classify_labels, dense_w, dense_b)
    ref = jax.block_until_ready(ref)

    assert jnp.isfinite(loss), f"non-finite loss: {loss}"
    assert jnp.allclose(loss, ref, rtol=5e-3, atol=5e-3), (loss, ref)
    print("KERNEL_OK")
</pallas_src>

<mosaic_0001>
module attributes {stable_mosaic.version = 11 : i64} {
  func.func @_promptcl_loss_kernel(%arg0: memref<16x32xf32, #tpu.memory_space<vmem>>, %arg1: memref<32x32xf32, #tpu.memory_space<vmem>>, %arg2: memref<1x32xf32, #tpu.memory_space<vmem>>, %arg3: memref<8x4xf32, #tpu.memory_space<vmem>>, %arg4: memref<8x1xi32, #tpu.memory_space<vmem>>, %arg5: memref<1x1xf32, #tpu.memory_space<smem>>) attributes {dimension_semantics = [], scalar_prefetch = 0 : i64, scratch_operands = 0 : i64, tpu.core_type = #tpu.core_type<tc>} {
    %c0 = arith.constant 0 : index
    %c0_0 = arith.constant 0 : index
    %0 = vector.load %arg0[%c0, %c0_0] : memref<16x32xf32, #tpu.memory_space<vmem>>, vector<16x32xf32>
    %c0_1 = arith.constant 0 : index
    %c0_2 = arith.constant 0 : index
    %1 = vector.load %arg1[%c0_1, %c0_2] : memref<32x32xf32, #tpu.memory_space<vmem>>, vector<32x32xf32>
    %cst = arith.constant dense<0.000000e+00> : vector<16x32xf32>
    %2 = tpu.matmul %0, %1, %cst {dimension_numbers = #tpu.dot_dimension_numbers<[1], [1], [0], [0], [0, 0, 1, 0], [], []>} : vector<16x32xf32>, vector<32x32xf32>, vector<16x32xf32> -> vector<16x32xf32>
    %c0_3 = arith.constant 0 : index
    %c0_4 = arith.constant 0 : index
    %3 = vector.load %arg2[%c0_3, %c0_4] : memref<1x32xf32, #tpu.memory_space<vmem>>, vector<1x32xf32>
    %4 = vector.broadcast %3 : vector<1x32xf32> to vector<16x32xf32>
    %5 = arith.addf %2, %4 : vector<16x32xf32>
    %6 = math.tanh %5 : vector<16x32xf32>
    %7 = arith.mulf %6, %6 : vector<16x32xf32>
    %cst_5 = arith.constant dense<0.000000e+00> : vector<16xf32>
    %8 = vector.multi_reduction <add>, %7, %cst_5 [1] : vector<16x32xf32> to vector<16xf32>
    %9 = vector.shape_cast %8 : vector<16xf32> to vector<16x1xf32>
    %cst_6 = arith.constant 1.000000e-24 : f32
    %10 = vector.broadcast %cst_6 : f32 to vector<16x1xf32>
    %11 = arith.maximumf %9, %10 : vector<16x1xf32>
    %12 = math.rsqrt %11 : vector<16x1xf32>
    %13 = vector.broadcast %12 : vector<16x1xf32> to vector<16x32xf32>
    %14 = arith.mulf %6, %13 : vector<16x32xf32>
    %15 = vector.extract_strided_slice %14 {offsets = [0, 0], sizes = [8, 32], strides = [1, 1]} : vector<16x32xf32> to vector<8x32xf32>
    %16 = vector.extract_strided_slice %14 {offsets = [8, 0], sizes = [8, 32], strides = [1, 1]} : vector<16x32xf32> to vector<8x32xf32>
    %cst_7 = arith.constant dense<0.000000e+00> : vector<8x8xf32>
    %17 = tpu.matmul %15, %16, %cst_7 {dimension_numbers = #tpu.dot_dimension_numbers<[1], [1], [0], [0], [0, 0, 1, 0], [], []>} : vector<8x32xf32>, vector<8x32xf32>, vector<8x8xf32> -> vector<8x8xf32>
    %cst_8 = arith.constant 2.000000e+01 : f32
    %18 = vector.broadcast %cst_8 : f32 to vector<8x8xf32>
    %19 = arith.mulf %17, %18 : vector<8x8xf32>
    %cst_9 = arith.constant 2.000000e+00 : f32
    %20 = vector.broadcast %cst_9 : f32 to vector<8x8xf32>
    %21 = arith.mulf %20, %17 : vector<8x8xf32>
    %cst_10 = arith.constant 2.000000e+00 : f32
    %22 = vector.broadcast %cst_10 : f32 to vector<8x8xf32>
    %23 = arith.subf %22, %21 : vector<8x8xf32>
    %cst_11 = arith.constant 3.200000e-11 : f32
    %24 = vector.broadcast %cst_11 : f32 to vector<8x8xf32>
    %25 = arith.addf %23, %24 : vector<8x8xf32>
    %cst_12 = arith.constant 0.000000e+00 : f32
    %26 = vector.broadcast %cst_12 : f32 to vector<8x8xf32>
    %27 = arith.maximumf %25, %26 : vector<8x8xf32>
    %28 = math.sqrt %27 : vector<8x8xf32>
    %c0_13 = arith.constant 0 : index
    %c0_14 = arith.constant 0 : index
    %29 = vector.load %arg4[%c0_13, %c0_14] : memref<8x1xi32, #tpu.memory_space<vmem>>, vector<8x1xi32>
    %30 = tpu.iota {dimensions = array<i32: 1>} : vector<8x4xi32>
    %31 = vector.broadcast %29 : vector<8x1xi32> to vector<8x4xi32>
    %32 = arith.cmpi eq, %30, %31 : vector<8x4xi32>
    %33 = arith.extui %32 : vector<8x4xi1> to vector<8x4xi32>
    %34 = arith.sitofp %33 : vector<8x4xi32> to vector<8x4xf32>
    %cst_15 = arith.constant dense<0.000000e+00> : vector<8x8xf32>
    %35 = tpu.matmul %34, %34, %cst_15 {dimension_numbers = #tpu.dot_dimension_numbers<[1], [1], [0], [0], [0, 0, 1, 0], [], []>} : vector<8x4xf32>, vector<8x4xf32>, vector<8x8xf32> -> vector<8x8xf32>
    %cst_16 = arith.constant 1.000000e+00 : f32
    %36 = vector.broadcast %cst_16 : f32 to vector<8x8xf32>
    %37 = arith.subf %36, %35 : vector<8x8xf32>
    %cst_17 = arith.constant dense<0.000000e+00> : vector<8xf32>
    %38 = vector.multi_reduction <add>, %37, %cst_17 [1] : vector<8x8xf32> to vector<8xf32>
    %39 = vector.shape_cast %38 : vector<8xf32> to vector<8x1xf32>
    %cst_18 = arith.constant 5.000000e-01 : f32
    %40 = vector.broadcast %cst_18 : f32 to vector<8x8xf32>
    %41 = arith.cmpf ogt, %35, %40 : vector<8x8xf32>
    %cst_19 = arith.constant 0.000000e+00 : f32
    %42 = vector.broadcast %cst_19 : f32 to vector<8x8xf32>
    %43 = arith.subf %42, %28 : vector<8x8xf32>
    %cst_20 = arith.constant -1.000000e+07 : f32
    %44 = vector.broadcast %cst_20 : f32 to vector<8x8xf32>
    %45 = arith.select %41, %44, %43 : vector<8x8xi1>, vector<8x8xf32>
    %cst_21 = arith.constant dense<0xFF800000> : vector<8xf32>
    %46 = vector.multi_reduction <maximumf>, %45, %cst_21 [1] : vector<8x8xf32> to vector<8xf32>
    %47 = vector.shape_cast %46 : vector<8xf32> to vector<8x1xf32>
    %48 = vector.broadcast %47 : vector<8x1xf32> to vector<8x8xf32>
    %49 = arith.subf %45, %48 : vector<8x8xf32>
    %50 = math.exp %49 : vector<8x8xf32>
    %cst_22 = arith.constant dense<0.000000e+00> : vector<8xf32>
    %51 = vector.multi_reduction <add>, %50, %cst_22 [1] : vector<8x8xf32> to vector<8xf32>
    %52 = vector.shape_cast %51 : vector<8xf32> to vector<8x1xf32>
    %53 = tpu.reciprocal %52 {approx = true} : vector<8x1xf32> -> vector<8x1xf32>
    %54 = vector.broadcast %53 : vector<8x1xf32> to vector<8x8xf32>
    %55 = arith.mulf %50, %54 : vector<8x8xf32>
    %56 = vector.broadcast %39 : vector<8x1xf32> to vector<8x8xf32>
    %57 = arith.mulf %56, %55 : vector<8x8xf32>
    %58 = arith.addf %57, %35 : vector<8x8xf32>
    %59 = math.exp %19 : vector<8x8xf32>
    %60 = arith.mulf %59, %58 : vector<8x8xf32>
    %cst_23 = arith.constant dense<0.000000e+00> : vector<8xf32>
    %61 = vector.multi_reduction <add>, %60, %cst_23 [1] : vector<8x8xf32> to vector<8xf32>
    %62 = vector.shape_cast %61 : vector<8xf32> to vector<8x1xf32>
    %63 = arith.mulf %15, %16 : vector<8x32xf32>
    %cst_24 = arith.constant dense<0.000000e+00> : vector<8xf32>
    %64 = vector.multi_reduction <add>, %63, %cst_24 [1] : vector<8x32xf32> to vector<8xf32>
    %65 = vector.shape_cast %64 : vector<8xf32> to vector<8x1xf32>
    %cst_25 = arith.constant 2.000000e+01 : f32
    %66 = vector.broadcast %cst_25 : f32 to vector<8x1xf32>
    %67 = arith.mulf %65, %66 : vector<8x1xf32>
    %68 = math.exp %67 : vector<8x1xf32>
    %69 = tpu.reciprocal %62 {approx = true} : vector<8x1xf32> -> vector<8x1xf32>
    %70 = arith.mulf %68, %69 : vector<8x1xf32>
    %cst_26 = arith.constant 9.99999974E-6 : f32
    %71 = vector.broadcast %cst_26 : f32 to vector<8x1xf32>
    %72 = arith.addf %70, %71 : vector<8x1xf32>
    %73 = math.log %72 : vector<8x1xf32>
    %cst_27 = arith.constant 0.000000e+00 : f32
    %74 = vector.broadcast %cst_27 : f32 to vector<8x1xf32>
    %75 = arith.subf %74, %73 : vector<8x1xf32>
    %c0_28 = arith.constant 0 : index
    %c0_29 = arith.constant 0 : index
    %76 = vector.load %arg3[%c0_28, %c0_29] : memref<8x4xf32, #tpu.memory_space<vmem>>, vector<8x4xf32>
    %cst_30 = arith.constant dense<0xFF800000> : vector<8xf32>
    %77 = vector.multi_reduction <maximumf>, %76, %cst_30 [1] : vector<8x4xf32> to vector<8xf32>
    %78 = vector.shape_cast %77 : vector<8xf32> to vector<8x1xf32>
    %79 = vector.broadcast %78 : vector<8x1xf32> to vector<8x4xf32>
    %80 = arith.subf %76, %79 : vector<8x4xf32>
    %81 = math.exp %80 : vector<8x4xf32>
    %cst_31 = arith.constant dense<0.000000e+00> : vector<8xf32>
    %82 = vector.multi_reduction <add>, %81, %cst_31 [1] : vector<8x4xf32> to vector<8xf32>
    %83 = vector.shape_cast %82 : vector<8xf32> to vector<8x1xf32>
    %84 = math.log %83 : vector<8x1xf32>
    %85 = arith.addf %84, %78 : vector<8x1xf32>
    %86 = arith.mulf %76, %34 : vector<8x4xf32>
    %cst_32 = arith.constant dense<0.000000e+00> : vector<8xf32>
    %87 = vector.multi_reduction <add>, %86, %cst_32 [1] : vector<8x4xf32> to vector<8xf32>
    %88 = vector.shape_cast %87 : vector<8xf32> to vector<8x1xf32>
    %89 = arith.subf %85, %88 : vector<8x1xf32>
    %cst_33 = arith.constant 1.500000e-01 : f32
    %90 = vector.broadcast %cst_33 : f32 to vector<8x1xf32>
    %91 = arith.mulf %90, %75 : vector<8x1xf32>
    %92 = arith.addf %89, %91 : vector<8x1xf32>
    %93 = vector.shape_cast %92 : vector<8x1xf32> to vector<1x8x1xf32>
    %cst_34 = arith.constant dense<0.000000e+00> : vector<1xf32>
    %94 = vector.multi_reduction <add>, %93, %cst_34 [1, 2] : vector<1x8x1xf32> to vector<1xf32>
    %95 = vector.shape_cast %94 : vector<1xf32> to vector<1x1x1xf32>
    %96 = vector.extract %95[0, 0, 0] : f32 from vector<1x1x1xf32>
    %cst_35 = arith.constant 1.250000e-01 : f32
    %97 = arith.mulf %96, %cst_35 : f32
    %c0_36 = arith.constant 0 : index
    %c0_37 = arith.constant 0 : index
    %98 = memref.load %arg5[%c0_36, %c0_37] : memref<1x1xf32, #tpu.memory_space<smem>>
    memref.store %97, %arg5[%c0_36, %c0_37] : memref<1x1xf32, #tpu.memory_space<smem>>
    return
  }
}

</mosaic_0001>

<bundles_post_ra>
// kernel: tpu_custom_call.1
= control target key start
LH: loop header
LB: loop body
LE: loop exit
PB: predicated region body
PF: predicated region fallthrough
CT: control target
= control target key end

     0   :  { %10 = vsyncpa [#allocation3], 0  ;;  %s618_s0 = inlined_call_operand.vmem [shape: f32[16,32], index: 0, kind: input, shape index: {}]   ;;  %s619_s1 = inlined_call_operand.hbm [shape: f32[32,32], index: 1, kind: input, shape index: {}]   ;;  %s620_s2 = inlined_call_operand.vmem [shape: f32[1,32], index: 2, kind: input, shape index: {}]   ;;  %s621_s3 = inlined_call_operand.vmem [shape: f32[8,4], index: 3, kind: input, shape index: {}]   ;;  %s622_s4 = inlined_call_operand.vmem [shape: s32[8,1], index: 4, kind: input, shape index: {}]   ;;  %s623_s5 = inlined_call_operand.hbm [shape: f32[1,1], index: 5, kind: output, shape index: {}]  }
   0x1   :  { %11 = vsyncpa [#allocation4], 0  ;;  %s529_s18 = smov [#allocation2]  }
   0x2   :  { %s19_s19 = sshll.u32 %s529_s18, 4  ;;  %s20_s19 = int_to_ptr.vmem [resolvable:$true] %s19_s19 }
   0x3   :  { %s505_s20 = scalar_lea.vmem %s20_s19, 512  ;;  %p510_p1 = scmp.lt.s32.totalorder %s20_s19, %s20_s19 }
   0x4   :  { %p506_p0 = scmp.ne.s32.totalorder %s20_s19, %s505_s20  ;;  %p511_p2 = scmp.lt.s32.totalorder %s505_s20, %s505_s20 }
   0x6   :  { %p512_p3 = por %p511_p2, %p510_p1 }
   0x8   :  { %p513_p4 = pnand %p512_p3, %p506_p0 }
   0xa   :  { %516 = shalt.err (!%p513_p4)
}
   0xb   :  { %s530_s21 = smov 128   ;;  %s531_s22 = smov 8  }
   0xc   :  { %25 = dma.hbm_to_vmem [thread:$0]  %s619_s1, 512, %s20_s19, [#allocation3], %s530_s21, %s530_s21, %s531_s22  }
   0xd   :  { %525 = dma.done.wait [#allocation3], 512  }
   0xe   :  { %526 = vsyncadd [#allocation3], 4294966784  ;;  %vm48_vm0 = vcmask 261120   ;;  %v40_v0 = vld [vmem:[#allocation2 + $0x18] sm:$0xff]  ;;  %v39_v1 = vld [vmem:[#allocation2 + $0x10] sm:$0xff]  ;;  %v532_v7 = vmov 0   ;;  %v247_v24 = vlaneseq }
   0xf   :  { %439 = vmatprep.subr.msk.mxu0 %vm48_vm0, %v40_v0  ;;  %v35_v2 = vld [vmem:[%s618_s0] sm:$0xff]  ;;  %v38_v3 = vld [vmem:[#allocation2 + $0x8] sm:$0xff]  ;;  %469 = vset.pattern.permute.xlu1 %v532_v7  ;;  %v533_v19 = vmov 0.0   ;;  %vm534_vm1 = vmmov 0   ;;  %vm255_vm3 = vcmask 31744   ;;  %vm330_vm7 = vcmask 64512  }
  0x10   :  { %440 = vmatpush3.xpose.msk.msra.mxu0 %vm48_vm0, %v40_v0  ;;  %447 = vmatprep.mubr.msk.f32.mxu0 %vm48_vm0, %v35_v2  ;;  %v37_v4 = vld [vmem:[#allocation2] sm:$0xff]  ;;  %v36_v5 = vld [vmem:[%s618_s0 + $0x8] sm:$0xff]  ;;  %v248_v25 = vand.u32 127, %v247_v24  ;;  %vm389_vm8 = vcmask 7168   ;;  %s535_s7 = smov [#allocation5]  }
  0x11   :  { %441 = vmatprep.subr.msk.mxu0 %vm48_vm0, %v39_v1  ;;  %v246_v6 = vld [vmem:[%s622_s4] sm:$0xff]  ;;  %470 = vset.pattern.permute.xlu0 %v532_v7 }
  0x12   :  { %250 = vperm.xlu1 %469, %v246_v6   ;;  %v417_v8 = vld [vmem:[%s620_s2] ss:$0 sm:$0xff]  ;;  %450 = vmatprep.subr.mxu1 %v533_v19 }
  0x13   :  { %452 = vmatprep.mubr.msk.f32.mxu1 %vm534_vm1, %v533_v19  ;;  %v369_v56 = vld [vmem:[%s621_s3] sm:$0xff] }
  0x14   :  { %442 = vmatpush3.xpose.msk.msra.mxu0 %vm48_vm0, %v39_v1  ;;  %v370_v57 = vsel %vm255_vm3, %v369_v56, -inf }
  0x15   :  { %443 = vmatprep.subr.msk.mxu0 %vm48_vm0, %v38_v3 }
  0x18   :  { %444 = vmatpush3.xpose.msk.msra.mxu0 %vm48_vm0, %v38_v3 }
  0x19   :  { %445 = vmatprep.subr.msk.mxu0 %vm48_vm0, %v37_v4 }
  0x1c   :  { %446 = vmatpush3.xpose.msk.msra.mxu0 %vm48_vm0, %v37_v4 }
  0x1f   :  { %448 = vmatmul.mubr.msk.f32.vlgmr.msra.gmra.mxu0 %vm48_vm0, %v36_v5 }
  0x8d   :  { %v251_v26 = vpop.permute.xlu1 %250 }
  0x8e   :  { %vm252_vm2 = vcmp.eq.s32.totalorder %v248_v25, %v251_v26 }
  0x8f   :  { %v595_v31 = vsel %vm252_vm2, 1.0, %v533_v19 }
  0xdf   :  { %v449_v9 = vpop.f32.mrf.mxu0 }
  0xe0   :  { %v139_v10 = vadd.f32 %v449_v9, %v417_v8 }
  0xe1   :  { %v133_v11 = vpop.f32.mrf.mxu0 }
  0xe2   :  { %471 = vtanh.f32 %v139_v10  ;;  %v134_v12 = vadd.f32 %v417_v8, %v133_v11  ;;  %v382_v11 = vmul.f32 %v595_v31, %v369_v56 }
  0xe4   :  { %473 = vtanh.f32 %v134_v12  ;;  %v383_v12 = vsel %vm255_vm3, %v382_v11, 0.0 }
  0xef   :  { %v472_v13 = vpop.eup %471 }
  0xf0   :  { %v145_v14 = vmul.f32 %v472_v13, %v472_v13 }
  0xf1   :  { %v474_v15 = vpop.eup %473 }
  0xf2   :  { %v149_v16 = vsel %vm48_vm0, %v145_v14, 0.0  ;;  %v144_v17 = vmul.f32 %v474_v15, %v474_v15 }
  0xf3   :  { %150 = vadd.xlane.f32.xlu0 %v149_v16 }
  0xf4   :  { %v146_v18 = vsel %vm48_vm0, %v144_v17, 0.0 }
  0xf7   :  { %147 = vadd.xlane.f32.xlu0 %v146_v18 }
 0x17c   :  { %v151_v20 = vpop.xlane.xlu0 %150 }
 0x17d   :  { %v153_v21 = vmax.f32 %v151_v20, 1e-24 }
 0x17f   :  { %475 = vrsqrt.f32 %v153_v21 }
 0x180   :  { %v148_v22 = vpop.xlane.xlu0 %147 }
 0x181   :  { %v152_v23 = vmax.f32 %v148_v22, 1e-24 }
 0x183   :  { %477 = vrsqrt.f32 %v152_v23 }
 0x18c   :  { %v476_v27 = vpop.eup %475 }
 0x18d   :  { %v157_v28 = vmul.f32 %v476_v27, %v472_v13 }
 0x18f   :  { %451 = vmatpush3.xpose.msk.msra.mxu1 %vm48_vm0, %v157_v28 }
 0x190   :  { %v478_v29 = vpop.eup %477  ;;  %455 = vmatprep.subr.mxu1 %v533_v19 }
 0x191   :  { %v156_v30 = vmul.f32 %v478_v29, %v474_v15 }
 0x193   :  { %453 = vmatmul.mubr.msk.f32.vlgmr.msra.gmra.mxu1 %vm48_vm0, %v156_v30  ;;  %v356_v32 = vmul.f32 %v157_v28, %v156_v30 }
 0x194   :  { %456 = vmatpush3.xpose.msk.msra.mxu1 %vm255_vm3, %v595_v31  ;;  %457 = vmatprep.mubr.msk.f32.mxu1 %vm534_vm1, %v533_v19 }
 0x195   :  { %v357_v58 = vsel %vm48_vm0, %v356_v32, 0.0 }
 0x197   :  { %458 = vmatmul.mubr.msk.f32.vlgmr.msra.gmra.mxu1 %vm255_vm3, %v595_v31 }
 0x253   :  { %v230_v33 = vpop.f32.mrf.mxu1 }
 0x254   :  { %v235_v34 = vmul.f32 2.0, %v230_v33  ;;  %v234_v59 = vmul.f32 20.0, %v230_v33 }
 0x255   :  { %v454_v35 = vpop.f32.mrf.mxu1 }
 0x256   :  { %v236_v36 = vsub.f32 2.0, %v235_v34  ;;  %v350_v61 = vmul.f32 1.442695, %v234_v59 }
 0x257   :  { %v325_v37 = vpop.f32.mrf.mxu1 }
 0x258   :  { %v237_v38 = vadd.f32 3.2e-11, %v236_v36  ;;  %vm334_vm6 = vcmp.gt.f32.partialorder %v325_v37, 0.5  ;;  %v329_v54 = vsub.f32 1.0, %v325_v37 }
 0x259   :  { %v459_v39 = vpop.f32.mrf.mxu1 }
 0x25a   :  { %v238_v40 = vmax.f32 %v237_v38, 0.0  ;;  %v331_v55 = vsel %vm330_vm7, %v329_v54, 0.0 }
 0x25c   :  { %479 = vrsqrt.f32 %v238_v40  ;;  %vm241_vm4 = vcmp.eq.f32.partialorder %v238_v40, inf  ;;  %v244_v43 = vand.u32 2147483648, %v238_v40  ;;  %vm243_vm5 = vcmp.eq.f32.partialorder %v238_v40, 0.0 }
 0x269   :  { %v480_v41 = vpop.eup %479 }
 0x26a   :  { %v240_v42 = vmul.f32 %v480_v41, %v238_v40 }
 0x26c   :  { %v242_v44 = vsel %vm241_vm4, %v238_v40, %v240_v42 }
 0x26d   :  { %v245_v45 = vsel %vm243_vm5, %v244_v43, %v242_v44 }
 0x26e   :  { %v335_v46 = vsub.f32 0.0, %v245_v45 }
 0x270   :  { %v336_v47 = vsel %vm334_vm6, -10000000.0, %v335_v46 }
 0x271   :  { %v337_v48 = vsel %vm330_vm7, %v336_v47, -inf }
 0x272   :  { %338 = vmax.xlane.f32.xlu1 %v337_v48 }
 0x2fb   :  { %v339_v49 = vpop.xlane.xlu1 %338 }
 0x2fc   :  { %v340_v50 = vsub.f32 %v336_v47, %v339_v49 }
 0x2fe   :  { %v341_v51 = vmul.f32 1.442695, %v340_v50 }
 0x300   :  { %481 = vpow2.f32 %v341_v51 }
 0x30d   :  { %v482_v52 = vpop.eup %481 }
 0x30e   :  { %v343_v53 = vsel %vm330_vm7, %v482_v52, 0.0 }
 0x30f   :  { %344 = vadd.xlane.f32.xlu0 %v343_v53 }
 0x313   :  { %332 = vadd.xlane.f32.xlu0 %v331_v55 }
 0x317   :  { %371 = vmax.xlane.f32.xlu0 %v370_v57 }
 0x31b   :  { %358 = vadd.xlane.f32.xlu0 %v357_v58 }
 0x398   :  { %v345_v60 = vpop.xlane.xlu0 %344 }
 0x399   :  { %483 = vrcp.f32 %v345_v60 }
 0x39a   :  { %485 = vpow2.f32 %v350_v61 }
 0x39c   :  { %v333_v62 = vpop.xlane.xlu0 %332 }
 0x3a0   :  { %v372_v63 = vpop.xlane.xlu0 %371 }
 0x3a1   :  { %v373_v0 = vsub.f32 %v369_v56, %v372_v63 }
 0x3a3   :  { %v374_v1 = vmul.f32 1.442695, %v373_v0 }
 0x3a4   :  { %v359_v13 = vpop.xlane.xlu0 %358 }
 0x3a5   :  { %487 = vpow2.f32 %v374_v1  ;;  %v360_v14 = vmul.f32 20.0, %v359_v13 }
 0x3a6   :  { %v484_v2 = vpop.eup %483 }
 0x3a7   :  { %v347_v3 = vmul.f32 %v484_v2, %v482_v52  ;;  %v486_v6 = vpop.eup %485  ;;  %v361_v15 = vmul.f32 1.442695, %v360_v14 }
 0x3a9   :  { %v348_v4 = vmul.f32 %v347_v3, %v333_v62  ;;  %489 = vpow2.f32 %v361_v15 }
 0x3ab   :  { %v349_v5 = vadd.f32 %v348_v4, %v325_v37 }
 0x3ad   :  { %v352_v7 = vmul.f32 %v486_v6, %v349_v5 }
 0x3af   :  { %v353_v8 = vsel %vm330_vm7, %v352_v7, 0.0 }
 0x3b0   :  { %354 = vadd.xlane.f32.xlu0 %v353_v8 }
 0x3b2   :  { %v488_v9 = vpop.eup %487 }
 0x3b3   :  { %v376_v10 = vsel %vm255_vm3, %v488_v9, 0.0 }
 0x3b4   :  { %377 = vadd.xlane.f32.xlu0 %v376_v10 }
 0x3b6   :  { %v490_v18 = vpop.eup %489 }
 0x3b8   :  { %384 = vadd.xlane.f32.xlu0 %v383_v12 }
 0x439   :  { %v355_v16 = vpop.xlane.xlu0 %354 }
 0x43a   :  { %491 = vrcp.f32 %v355_v16 }
 0x43d   :  { %v378_v17 = vpop.xlane.xlu0 %377 }
 0x43e   :  { %493 = vlog2.f32 %v378_v17 }
 0x441   :  { %v385_v28 = vpop.xlane.xlu0 %384 }
 0x447   :  { %v492_v19 = vpop.eup %491 }
 0x448   :  { %v364_v20 = vmul.f32 %v492_v19, %v490_v18 }
 0x44a   :  { %v365_v21 = vadd.f32 1e-05, %v364_v20 }
 0x44b   :  { %v494_v22 = vpop.eup %493 }
 0x44c   :  { %495 = vlog2.f32 %v365_v21  ;;  %v380_v23 = vmul.f32 0.6931472, %v494_v22 }
 0x44e   :  { %v381_v25 = vadd.f32 %v380_v23, %v372_v63 }
 0x450   :  { %v386_v29 = vsub.f32 %v381_v25, %v385_v28 }
 0x459   :  { %v496_v24 = vpop.eup %495 }
 0x45a   :  { %v367_v26 = vmul.f32 0.6931472, %v496_v24 }
 0x45c   :  { %v368_v27 = vsub.f32 0.0, %v367_v26 }
 0x45e   :  { %v387_v30 = vmul.f32 0.15, %v368_v27 }
 0x460   :  { %v388_v31 = vadd.f32 %v387_v30, %v386_v29 }
 0x462   :  { %v390_v32 = vsel %vm389_vm8, %v388_v31, 0.0 }
 0x463   :  { %391 = vadd.xlane.f32.xlu0 %v390_v32 }
 0x4ec   :  { %v392_v33 = vpop.xlane.xlu0 %391 }
 0x4ed   :  { %v393_v34 = vrot.slane %v392_v33, 4 }
 0x4ef   :  { %v394_v35 = vadd.f32 %v393_v34, %v392_v33 }
 0x4f1   :  { %v395_v36 = vrot.slane %v394_v35, 2 }
 0x4f3   :  { %v396_v37 = vadd.f32 %v395_v36, %v394_v35 }
 0x4f5   :  { %v397_v38 = vrot.slane %v396_v37, 1 }
 0x4f7   :  { %v398_v39 = vadd.f32 %v397_v38, %v396_v37 }
 0x4f9   :  { %460 = vpush %v398_v39 }
 0x52a   :  { %s461_s3 = spop %460 }
 0x52b   :  { %s400_s4 = smul.f32 0.125, %s461_s3 }
 0x52d   :  { %402 = sst [smem:[#allocation5]] %s400_s4 }
 0x52e   :  { %410 = dma.smem_to_hbm %s535_s7, 16, %s623_s5, [#allocation4]  }
 0x52f   :  { %527 = dma.done.wait [#allocation4], 16  }
 0x530   :  { %528 = vsyncadd [#allocation4], 4294967280 }
 0x531   :  { %414 = sfence }
 0x532   :  { %415 = vsyncpa [#allocation3], 1 }
 0x533   :  { %416 = vsyncpa [#allocation4], 1 }

</bundles_post_ra>
